<compile_context>
chip_gen: v6e
topology: v6e:2x2x1
jax: 0.10.0
libtpu: 0.0.40
codegen_flags: <defaults>
</compile_context>

<pallas_src>
import numpy as np
import jax
import jax.numpy as jnp
from jax import lax
from jax.experimental import pallas as pl
from jax.experimental.pallas import tpu as pltpu


def _round_up(x, m):
    return ((x + m - 1) // m) * m


# ----------------------------------------------------------------------------
# Pallas kernel + wrapper
# ----------------------------------------------------------------------------
def set_criterion_pallas(pred_logits, target_classes, matched_logits,
                         matched_labels, src_boxes, tgt_boxes_m,
                         tgt_lengths, num_boxes, eos_coef):
    """Layout plumbing + single pallas_call. All compute is f32 in-kernel."""
    B, Q, C1 = pred_logits.shape
    N = matched_logits.shape[0]
    B_pad = _round_up(max(B, 1), 8)
    L = max(_round_up(Q, 128), _round_up(max(N, 1), 128))  # common lane width
    no_obj = C1 - 1
    box_off = C1 + 1                       # first src-box row in pairs_packed
    P_rows = _round_up(C1 + 9, 8)          # logits rows + label + 8 box rows

    # ---- per-(batch, query) planes: class axis leading, Q lane-dense --------
    logits_t = jnp.transpose(pred_logits, (2, 0, 1)).astype(jnp.float32)   # [C1,B,Q]
    bq = jnp.zeros((C1 + 2, B_pad, L), jnp.float32)
    bq = bq.at[:C1, :B, :Q].set(logits_t)
    bq = bq.at[C1, :B, :Q].set(target_classes.astype(jnp.float32))
    bq = bq.at[C1 + 1, :B, :].set(
        jnp.broadcast_to(tgt_lengths.astype(jnp.float32)[:, None], (B, L)))

    # ---- all per-matched-pair rows in one lane-dense buffer ------------------
    pairs = jnp.zeros((P_rows, L), jnp.float32)
    pairs = pairs.at[:C1, :N].set(matched_logits.astype(jnp.float32).T)
    pairs = pairs.at[C1, :N].set(matched_labels.astype(jnp.float32))
    pairs = pairs.at[box_off:box_off + 4, :N].set(src_boxes.astype(jnp.float32).T)
    pairs = pairs.at[box_off + 4:box_off + 8, :N].set(
        tgt_boxes_m.astype(jnp.float32).T)

    scalars = jnp.asarray([num_boxes, eos_coef], jnp.float32)

    def kernel(bq_ref, pairs_ref, scalars_ref, out_ref):
        eps = 1e-7
        num_boxes_c = jnp.maximum(scalars_ref[0], 1.0)      # mirror host clamp
        inv_nb = 1.0 / num_boxes_c                          # hoisted reciprocal
        eos = scalars_ref[1]

        # ---- validity masks: padding never leaks into a reduction ----------
        bi = lax.broadcasted_iota(jnp.int32, (B_pad, L), 0)
        qi = lax.broadcasted_iota(jnp.int32, (B_pad, L), 1)
        valid_bq = ((bi < B) & (qi < Q)).astype(jnp.float32)
        ni = lax.broadcasted_iota(jnp.int32, (1, L), 1)
        valid_n = (ni < N).astype(jnp.float32)

        tcls = bq_ref[C1]                                   # [B_pad, L] float classes

        # ---- fused max / argmax / target-logit gather (pass 1) --------------
        planes = [bq_ref[c] for c in range(C1)]
        best = planes[0]
        best_idx = jnp.zeros((B_pad, L), jnp.float32)
        tgt_logit = jnp.where(jnp.abs(tcls - 0.0) < 0.5, planes[0], 0.0)
        for c in range(1, C1):
            p = planes[c]
            take = p > best
            best = jnp.where(take, p, best)
            best_idx = jnp.where(take, float(c), best_idx)
            tgt_logit = jnp.where(jnp.abs(tcls - float(c)) < 0.5, p, tgt_logit)
        mx = best

        # ---- LSE (pass 2) + weighted NLL + cardinality indicator ------------
        sexp = jnp.zeros((B_pad, L), jnp.float32)
        for c in range(C1):
            sexp = sexp + jnp.exp(planes[c] - mx)
        nll = mx + jnp.log(sexp) - tgt_logit
        w = jnp.where(jnp.abs(tcls - float(no_obj)) < 0.5, eos, 1.0) * valid_bq
        wnll = w * nll
        not_empty = jnp.where(jnp.abs(best_idx - float(no_obj)) < 0.5,
                              0.0, 1.0) * valid_bq

        # ---- matched pairs: class_error / L1 / GIoU --------------------------
        pr = pairs_ref[...]                                  # [P_rows, L]
        mbest = pr[0:1, :]
        midx = jnp.zeros((1, L), jnp.float32)
        for c in range(1, C1):
            row = pr[c:c + 1, :]
            take = row > mbest
            mbest = jnp.where(take, row, mbest)
            midx = jnp.where(take, float(c), midx)
        labels = pr[C1:C1 + 1, :]
        correct = jnp.where(jnp.abs(midx - labels) < 0.5, 1.0, 0.0) * valid_n

        o = box_off
        scx, scy = pr[o:o + 1], pr[o + 1:o + 2]
        sw, sh = pr[o + 2:o + 3], pr[o + 3:o + 4]
        tcx, tcy = pr[o + 4:o + 5], pr[o + 5:o + 6]
        tw, th = pr[o + 6:o + 7], pr[o + 7:o + 8]

        l1 = (jnp.abs(scx - tcx) + jnp.abs(scy - tcy) +
              jnp.abs(sw - tw) + jnp.abs(sh - th)) * valid_n

        sx0, sx1 = scx - 0.5 * sw, scx + 0.5 * sw
        sy0, sy1 = scy - 0.5 * sh, scy + 0.5 * sh
        tx0, tx1 = tcx - 0.5 * tw, tcx + 0.5 * tw
        ty0, ty1 = tcy - 0.5 * th, tcy + 0.5 * th
        area_s = (sx1 - sx0) * (sy1 - sy0)
        area_t = (tx1 - tx0) * (ty1 - ty0)
        iw = jnp.maximum(jnp.minimum(sx1, tx1) - jnp.maximum(sx0, tx0), 0.0)
        ih = jnp.maximum(jnp.minimum(sy1, ty1) - jnp.maximum(sy0, ty0), 0.0)
        inter = iw * ih
        union = jnp.maximum(area_s + area_t - inter, eps)    # eps guard
        iou = inter / union
        cw = jnp.maximum(jnp.maximum(sx1, tx1) - jnp.minimum(sx0, tx0), 0.0)
        ch = jnp.maximum(jnp.maximum(sy1, ty1) - jnp.minimum(sy0, ty0), 0.0)
        area_c = jnp.maximum(cw * ch, eps)                   # eps guard
        giou = iou - (area_c - union) / area_c
        one_minus_giou = (1.0 - giou) * valid_n

        # ---- one stacked lane-reduce for all partial sums --------------------
        si = lax.broadcasted_iota(jnp.int32, (8, L), 0)
        pair_block = jnp.where(si == 0, correct,
                     jnp.where(si == 1, l1,
                     jnp.where(si == 2, one_minus_giou, 0.0)))
        stacked = jnp.concatenate([wnll, w, not_empty, pair_block], axis=0)
        col = jnp.sum(stacked, axis=1, keepdims=True)        # [3*B_pad+8, 1]

        ce_num = jnp.sum(col[0:B_pad], keepdims=True)                 # [1,1]
        ce_den = jnp.sum(col[B_pad:2 * B_pad], keepdims=True)         # [1,1]
        card_pred = col[2 * B_pad:3 * B_pad]                          # [B_pad,1]
        tlen_col = bq_ref[C1 + 1][:, 0:1]                             # [B_pad,1]
        bcol = lax.broadcasted_iota(jnp.int32, (B_pad, 1), 0)
        valid_b = (bcol < B).astype(jnp.float32)
        card_sum = jnp.sum(jnp.abs(card_pred - tlen_col) * valid_b,
                           keepdims=True)                              # [1,1]
        base = 3 * B_pad
        correct_sum = col[base:base + 1]                               # [1,1]
        l1_sum = col[base + 1:base + 2]
        omg_sum = col[base + 2:base + 3]

        loss_ce = ce_num / ce_den
        class_error = 100.0 - 100.0 * correct_sum / float(max(N, 1))
        card_err = card_sum / float(B)
        loss_bbox = l1_sum * inv_nb
        loss_giou = omg_sum * inv_nb

        # ---- single lane-dense output write ----------------------------------
        lane = lax.broadcasted_iota(jnp.int32, (1, 128), 1)
        res = jnp.where(lane == 0, loss_ce,
              jnp.where(lane == 1, class_error,
              jnp.where(lane == 2, card_err,
              jnp.where(lane == 3, loss_bbox,
              jnp.where(lane == 4, loss_giou, 0.0)))))
        out_ref[...] = res

    vmem = pl.BlockSpec(memory_space=pltpu.MemorySpace.VMEM)
    smem = pl.BlockSpec(memory_space=pltpu.MemorySpace.SMEM)
    out = pl.pallas_call(
        kernel,
        out_shape=jax.ShapeDtypeStruct((1, 128), jnp.float32),
        in_specs=[vmem, vmem, smem],
        out_specs=pl.BlockSpec(memory_space=pltpu.MemorySpace.VMEM),
    )(bq, pairs, scalars)

    names = ["loss_ce", "class_error", "cardinality_error",
             "loss_bbox", "loss_giou"]
    return {k: out[0, i] for i, k in enumerate(names)}


# ----------------------------------------------------------------------------
# Glue: box utilities + simplified (greedy) matcher.
# ----------------------------------------------------------------------------
def box_cxcywh_to_xyxy(b):
    cx, cy, w, h = b[..., 0], b[..., 1], b[..., 2], b[..., 3]
    return jnp.stack([cx - 0.5 * w, cy - 0.5 * h,
                      cx + 0.5 * w, cy + 0.5 * h], axis=-1)


def generalized_box_iou_pairwise(a, b):
    # a: [Q,4] xyxy, b: [T,4] xyxy -> [Q,T]
    area_a = (a[:, 2] - a[:, 0]) * (a[:, 3] - a[:, 1])
    area_b = (b[:, 2] - b[:, 0]) * (b[:, 3] - b[:, 1])
    lt = jnp.maximum(a[:, None, :2], b[None, :, :2])
    rb = jnp.minimum(a[:, None, 2:], b[None, :, 2:])
    wh = jnp.maximum(rb - lt, 0.0)
    inter = wh[..., 0] * wh[..., 1]
    union = area_a[:, None] + area_b[None, :] - inter
    iou = inter / union
    lt2 = jnp.minimum(a[:, None, :2], b[None, :, :2])
    rb2 = jnp.maximum(a[:, None, 2:], b[None, :, 2:])
    wh2 = jnp.maximum(rb2 - lt2, 0.0)
    area_c = wh2[..., 0] * wh2[..., 1]
    return iou - (area_c - union) / area_c


def greedy_matcher(pred_logits, pred_boxes, tgt_labels, tgt_boxes,
                   cost_class=1.0, cost_bbox=5.0, cost_giou=2.0):
    """Simplified matcher: batched on-device cost, one D2H copy, greedy argmin."""
    B, Q, _ = pred_logits.shape
    T = tgt_labels.shape[1]
    probs = jax.nn.softmax(pred_logits, axis=-1)
    bsel = jnp.arange(B)[:, None, None]
    qsel = jnp.arange(Q)[None, :, None]
    c_class = -probs[bsel, qsel, tgt_labels[:, None, :]]                  # [B,Q,T]
    c_bbox = jnp.sum(jnp.abs(pred_boxes[:, :, None, :] -
                             tgt_boxes[:, None, :, :]), axis=-1)          # [B,Q,T]
    c_giou = -jax.vmap(generalized_box_iou_pairwise)(
        box_cxcywh_to_xyxy(pred_boxes), box_cxcywh_to_xyxy(tgt_boxes))    # [B,Q,T]
    cost = cost_class * c_class + cost_bbox * c_bbox + cost_giou * c_giou
    cost_h = np.asarray(jax.device_get(cost))                             # single D2H

    indices = []
    for b in range(B):
        Cb = cost_h[b]
        used = np.zeros(Q, dtype=bool)
        src, tgt = [], []
        for j in range(T):
            col = Cb[:, j].copy()
            col[used] = np.inf
            i = int(np.argmin(col))
            used[i] = True
            src.append(i)
            tgt.append(j)
        indices.append((np.array(src, np.int32), np.array(tgt, np.int32)))
    return indices


# ----------------------------------------------------------------------------
# Pure-JAX reference (same math, no Pallas) for a sanity check.
# ----------------------------------------------------------------------------
def reference_losses(logits, target_classes, empty_weight, matched_logits,
                     matched_labels, src_boxes, tgt_boxes_m, tgt_lengths,
                     num_boxes):
    B, Q, C1 = logits.shape
    logp = jax.nn.log_softmax(logits, axis=-1)
    oh = jax.nn.one_hot(target_classes, C1)
    nll = -jnp.sum(logp * oh, axis=-1)
    w = empty_weight[target_classes]
    loss_ce = jnp.sum(w * nll) / jnp.sum(w)

    pred = jnp.argmax(matched_logits, axis=-1)
    acc = 100.0 * jnp.mean((pred == matched_labels).astype(jnp.float32))
    class_error = 100.0 - acc

    card_pred = jnp.sum((jnp.argmax(logits, -1) != C1 - 1).astype(jnp.float32),
                        axis=1)
    card_err = jnp.mean(jnp.abs(card_pred - tgt_lengths))

    loss_bbox = jnp.sum(jnp.abs(src_boxes - tgt_boxes_m)) / num_boxes

    a = box_cxcywh_to_xyxy(src_boxes)
    b = box_cxcywh_to_xyxy(tgt_boxes_m)
    area_a = (a[:, 2] - a[:, 0]) * (a[:, 3] - a[:, 1])
    area_b = (b[:, 2] - b[:, 0]) * (b[:, 3] - b[:, 1])
    iw = jnp.maximum(jnp.minimum(a[:, 2], b[:, 2]) -
                     jnp.maximum(a[:, 0], b[:, 0]), 0.0)
    ih = jnp.maximum(jnp.minimum(a[:, 3], b[:, 3]) -
                     jnp.maximum(a[:, 1], b[:, 1]), 0.0)
    inter = iw * ih
    union = area_a + area_b - inter
    iou = inter / union
    cw = jnp.maximum(a[:, 2], b[:, 2]) - jnp.minimum(a[:, 0], b[:, 0])
    ch = jnp.maximum(a[:, 3], b[:, 3]) - jnp.minimum(a[:, 1], b[:, 1])
    area_c = cw * ch
    giou = iou - (area_c - union) / area_c
    loss_giou = jnp.sum(1.0 - giou) / num_boxes

    return {"loss_ce": loss_ce, "class_error": class_error,
            "cardinality_error": card_err, "loss_bbox": loss_bbox,
            "loss_giou": loss_giou}


# ----------------------------------------------------------------------------
# Main
# ----------------------------------------------------------------------------
if __name__ == "__main__":
    B, Q, T = 2, 8, 4            # batch, queries, gt boxes per image
    num_classes = 2
    C1 = num_classes + 1
    eos_coef = 0.1
    weight_dict = {"loss_ce": 1.0, "loss_bbox": 5.0, "loss_giou": 2.0}  # unused here
    losses_list = ["labels", "cardinality", "boxes"]                    # 'masks' skipped

    key = jax.random.PRNGKey(0)
    k1, k2, k3, k4 = jax.random.split(key, 4)

    pred_logits = jax.random.normal(k1, (B, Q, C1), dtype=jnp.float32)
    pred_boxes = jax.nn.sigmoid(jax.random.normal(k2, (B, Q, 4),
                                                  dtype=jnp.float32))
    tgt_labels = jax.random.randint(k3, (B, T), 0, num_classes, dtype=jnp.int32)
    u = jax.random.uniform(k4, (B, T, 4), dtype=jnp.float32)
    tgt_boxes = jnp.concatenate([0.3 + 0.4 * u[..., :2],
                                 0.05 + 0.20 * u[..., 2:]], axis=-1)

    # empty_weight buffer (deterministic init, as in __init__) -- reference only
    empty_weight = jnp.ones((C1,), jnp.float32).at[-1].set(eos_coef)

    # ---- matcher (glue) ------------------------------------------------------
    indices = greedy_matcher(pred_logits, pred_boxes, tgt_labels, tgt_boxes)

    # ---- build dense / gathered inputs (glue): single host pull --------------
    logits_h, boxes_h, labels_h, tboxes_h = map(
        np.asarray,
        jax.device_get((pred_logits, pred_boxes, tgt_labels, tgt_boxes)))

    target_classes = np.full((B, Q), num_classes, dtype=np.int32)
    m_logits, m_labels, s_boxes, t_boxes = [], [], [], []
    for b, (src, tgt) in enumerate(indices):
        target_classes[b, src] = labels_h[b][tgt]
        m_logits.append(logits_h[b][src])
        m_labels.append(labels_h[b][tgt])
        s_boxes.append(boxes_h[b][src])
        t_boxes.append(tboxes_h[b][tgt])

    target_classes = jnp.asarray(target_classes)
    matched_logits = jnp.asarray(np.concatenate(m_logits, 0))          # [N,C1]
    matched_labels = jnp.asarray(np.concatenate(m_labels, 0))          # [N]
    src_boxes = jnp.asarray(np.concatenate(s_boxes, 0))                # [N,4]
    tgt_boxes_m = jnp.asarray(np.concatenate(t_boxes, 0))              # [N,4]
    tgt_lengths = jnp.full((B,), float(T), jnp.float32)
    num_boxes = max(float(B * T), 1.0)                                 # clamp min 1

    # ---- Pallas kernel -------------------------------------------------------
    out = set_criterion_pallas(pred_logits, target_classes, matched_logits,
                               matched_labels, src_boxes, tgt_boxes_m,
                               tgt_lengths, num_boxes, eos_coef)
    out = {k: jax.block_until_ready(v) for k, v in out.items()}

    # ---- sanity check vs pure-JAX reference ----------------------------------
    ref = reference_losses(pred_logits, target_classes, empty_weight,
                           matched_logits, matched_labels,
                           src_boxes, tgt_boxes_m, tgt_lengths, num_boxes)
    for k in out:
        np.testing.assert_allclose(np.asarray(out[k]), np.asarray(ref[k]),
                                   rtol=1e-4, atol=1e-4)

    print("KERNEL_OK")
</pallas_src>

<mosaic_0001>
module attributes {stable_mosaic.version = 11 : i64} {
  func.func @kernel(%arg0: memref<5x8x128xf32, #tpu.memory_space<vmem>>, %arg1: memref<16x128xf32, #tpu.memory_space<vmem>>, %arg2: memref<2xf32, #tpu.memory_space<smem>>, %arg3: memref<1x128xf32, #tpu.memory_space<vmem>>) attributes {dimension_semantics = [], scalar_prefetch = 0 : i64, scratch_operands = 0 : i64, tpu.core_type = #tpu.core_type<tc>} {
    %c0 = arith.constant 0 : index
    %0 = memref.load %arg2[%c0] : memref<2xf32, #tpu.memory_space<smem>>
    %cst = arith.constant 1.000000e+00 : f32
    %1 = arith.maximumf %0, %cst : f32
    %cst_0 = arith.constant 1.000000e+00 : f32
    %2 = arith.divf %cst_0, %1 : f32
    %c1 = arith.constant 1 : index
    %3 = memref.load %arg2[%c1] : memref<2xf32, #tpu.memory_space<smem>>
    %4 = tpu.iota {dimensions = array<i32: 0>} : vector<8x128xi32>
    %5 = tpu.iota {dimensions = array<i32: 1>} : vector<8x128xi32>
    %c2_i32 = arith.constant 2 : i32
    %6 = vector.broadcast %c2_i32 : i32 to vector<8x128xi32>
    %7 = arith.cmpi slt, %4, %6 : vector<8x128xi32>
    %c8_i32 = arith.constant 8 : i32
    %8 = vector.broadcast %c8_i32 : i32 to vector<8x128xi32>
    %9 = arith.cmpi slt, %5, %8 : vector<8x128xi32>
    %10 = arith.andi %7, %9 : vector<8x128xi1>
    %11 = arith.extui %10 : vector<8x128xi1> to vector<8x128xi32>
    %12 = arith.sitofp %11 : vector<8x128xi32> to vector<8x128xf32>
    %13 = tpu.iota {dimensions = array<i32: 1>} : vector<1x128xi32>
    %c8_i32_1 = arith.constant 8 : i32
    %14 = vector.broadcast %c8_i32_1 : i32 to vector<1x128xi32>
    %15 = arith.cmpi slt, %13, %14 : vector<1x128xi32>
    %16 = arith.extui %15 : vector<1x128xi1> to vector<1x128xi32>
    %17 = arith.sitofp %16 : vector<1x128xi32> to vector<1x128xf32>
    %c3 = arith.constant 3 : index
    %c0_2 = arith.constant 0 : index
    %c0_3 = arith.constant 0 : index
    %18 = vector.load %arg0[%c3, %c0_2, %c0_3] : memref<5x8x128xf32, #tpu.memory_space<vmem>>, vector<1x8x128xf32>
    %19 = vector.shape_cast %18 : vector<1x8x128xf32> to vector<8x128xf32>
    %c0_4 = arith.constant 0 : index
    %c0_5 = arith.constant 0 : index
    %c0_6 = arith.constant 0 : index
    %20 = vector.load %arg0[%c0_4, %c0_5, %c0_6] : memref<5x8x128xf32, #tpu.memory_space<vmem>>, vector<1x8x128xf32>
    %21 = vector.shape_cast %20 : vector<1x8x128xf32> to vector<8x128xf32>
    %c1_7 = arith.constant 1 : index
    %c0_8 = arith.constant 0 : index
    %c0_9 = arith.constant 0 : index
    %22 = vector.load %arg0[%c1_7, %c0_8, %c0_9] : memref<5x8x128xf32, #tpu.memory_space<vmem>>, vector<1x8x128xf32>
    %23 = vector.shape_cast %22 : vector<1x8x128xf32> to vector<8x128xf32>
    %c2 = arith.constant 2 : index
    %c0_10 = arith.constant 0 : index
    %c0_11 = arith.constant 0 : index
    %24 = vector.load %arg0[%c2, %c0_10, %c0_11] : memref<5x8x128xf32, #tpu.memory_space<vmem>>, vector<1x8x128xf32>
    %25 = vector.shape_cast %24 : vector<1x8x128xf32> to vector<8x128xf32>
    %cst_12 = arith.constant 0.000000e+00 : f32
    %26 = vector.broadcast %cst_12 : f32 to vector<8x128xf32>
    %cst_13 = arith.constant 0.000000e+00 : f32
    %27 = vector.broadcast %cst_13 : f32 to vector<8x128xf32>
    %28 = arith.subf %19, %27 : vector<8x128xf32>
    %29 = math.absf %28 : vector<8x128xf32>
    %cst_14 = arith.constant 5.000000e-01 : f32
    %30 = vector.broadcast %cst_14 : f32 to vector<8x128xf32>
    %31 = arith.cmpf olt, %29, %30 : vector<8x128xf32>
    %cst_15 = arith.constant 0.000000e+00 : f32
    %32 = vector.broadcast %cst_15 : f32 to vector<8x128xf32>
    %33 = arith.select %31, %21, %32 : vector<8x128xi1>, vector<8x128xf32>
    %34 = arith.cmpf ogt, %23, %21 : vector<8x128xf32>
    %35 = arith.select %34, %23, %21 : vector<8x128xi1>, vector<8x128xf32>
    %cst_16 = arith.constant 1.000000e+00 : f32
    %36 = vector.broadcast %cst_16 : f32 to vector<8x128xf32>
    %37 = arith.select %34, %36, %26 : vector<8x128xi1>, vector<8x128xf32>
    %cst_17 = arith.constant 1.000000e+00 : f32
    %38 = vector.broadcast %cst_17 : f32 to vector<8x128xf32>
    %39 = arith.subf %19, %38 : vector<8x128xf32>
    %40 = math.absf %39 : vector<8x128xf32>
    %cst_18 = arith.constant 5.000000e-01 : f32
    %41 = vector.broadcast %cst_18 : f32 to vector<8x128xf32>
    %42 = arith.cmpf olt, %40, %41 : vector<8x128xf32>
    %43 = arith.select %42, %23, %33 : vector<8x128xi1>, vector<8x128xf32>
    %44 = arith.cmpf ogt, %25, %35 : vector<8x128xf32>
    %45 = arith.select %44, %25, %35 : vector<8x128xi1>, vector<8x128xf32>
    %cst_19 = arith.constant 2.000000e+00 : f32
    %46 = vector.broadcast %cst_19 : f32 to vector<8x128xf32>
    %47 = arith.select %44, %46, %37 : vector<8x128xi1>, vector<8x128xf32>
    %cst_20 = arith.constant 2.000000e+00 : f32
    %48 = vector.broadcast %cst_20 : f32 to vector<8x128xf32>
    %49 = arith.subf %19, %48 : vector<8x128xf32>
    %50 = math.absf %49 : vector<8x128xf32>
    %cst_21 = arith.constant 5.000000e-01 : f32
    %51 = vector.broadcast %cst_21 : f32 to vector<8x128xf32>
    %52 = arith.cmpf olt, %50, %51 : vector<8x128xf32>
    %53 = arith.select %52, %25, %43 : vector<8x128xi1>, vector<8x128xf32>
    %cst_22 = arith.constant 0.000000e+00 : f32
    %54 = vector.broadcast %cst_22 : f32 to vector<8x128xf32>
    %55 = arith.subf %21, %45 : vector<8x128xf32>
    %56 = math.exp %55 : vector<8x128xf32>
    %57 = arith.addf %54, %56 : vector<8x128xf32>
    %58 = arith.subf %23, %45 : vector<8x128xf32>
    %59 = math.exp %58 : vector<8x128xf32>
    %60 = arith.addf %57, %59 : vector<8x128xf32>
    %61 = arith.subf %25, %45 : vector<8x128xf32>
    %62 = math.exp %61 : vector<8x128xf32>
    %63 = arith.addf %60, %62 : vector<8x128xf32>
    %64 = math.log %63 : vector<8x128xf32>
    %65 = arith.addf %45, %64 : vector<8x128xf32>
    %66 = arith.subf %65, %53 : vector<8x128xf32>
    %cst_23 = arith.constant 2.000000e+00 : f32
    %67 = vector.broadcast %cst_23 : f32 to vector<8x128xf32>
    %68 = arith.subf %19, %67 : vector<8x128xf32>
    %69 = math.absf %68 : vector<8x128xf32>
    %cst_24 = arith.constant 5.000000e-01 : f32
    %70 = vector.broadcast %cst_24 : f32 to vector<8x128xf32>
    %71 = arith.cmpf olt, %69, %70 : vector<8x128xf32>
    %cst_25 = arith.constant 1.000000e+00 : f32
    %72 = vector.broadcast %3 : f32 to vector<8x128xf32>
    %73 = vector.broadcast %cst_25 : f32 to vector<8x128xf32>
    %74 = arith.select %71, %72, %73 : vector<8x128xi1>, vector<8x128xf32>
    %75 = arith.mulf %74, %12 : vector<8x128xf32>
    %76 = arith.mulf %75, %66 : vector<8x128xf32>
    %cst_26 = arith.constant 2.000000e+00 : f32
    %77 = vector.broadcast %cst_26 : f32 to vector<8x128xf32>
    %78 = arith.subf %47, %77 : vector<8x128xf32>
    %79 = math.absf %78 : vector<8x128xf32>
    %cst_27 = arith.constant 5.000000e-01 : f32
    %80 = vector.broadcast %cst_27 : f32 to vector<8x128xf32>
    %81 = arith.cmpf olt, %79, %80 : vector<8x128xf32>
    %cst_28 = arith.constant 0.000000e+00 : f32
    %cst_29 = arith.constant 1.000000e+00 : f32
    %82 = vector.broadcast %cst_28 : f32 to vector<8x128xf32>
    %83 = vector.broadcast %cst_29 : f32 to vector<8x128xf32>
    %84 = arith.select %81, %82, %83 : vector<8x128xi1>, vector<8x128xf32>
    %85 = arith.mulf %84, %12 : vector<8x128xf32>
    %c0_30 = arith.constant 0 : index
    %c0_31 = arith.constant 0 : index
    %86 = vector.load %arg1[%c0_30, %c0_31] : memref<16x128xf32, #tpu.memory_space<vmem>>, vector<16x128xf32>
    %87 = vector.extract_strided_slice %86 {offsets = [0, 0], sizes = [1, 128], strides = [1, 1]} : vector<16x128xf32> to vector<1x128xf32>
    %cst_32 = arith.constant 0.000000e+00 : f32
    %88 = vector.broadcast %cst_32 : f32 to vector<1x128xf32>
    %89 = vector.extract_strided_slice %86 {offsets = [1, 0], sizes = [1, 128], strides = [1, 1]} : vector<16x128xf32> to vector<1x128xf32>
    %90 = arith.cmpf ogt, %89, %87 : vector<1x128xf32>
    %91 = arith.select %90, %89, %87 : vector<1x128xi1>, vector<1x128xf32>
    %cst_33 = arith.constant 1.000000e+00 : f32
    %92 = vector.broadcast %cst_33 : f32 to vector<1x128xf32>
    %93 = arith.select %90, %92, %88 : vector<1x128xi1>, vector<1x128xf32>
    %94 = vector.extract_strided_slice %86 {offsets = [2, 0], sizes = [1, 128], strides = [1, 1]} : vector<16x128xf32> to vector<1x128xf32>
    %95 = arith.cmpf ogt, %94, %91 : vector<1x128xf32>
    %cst_34 = arith.constant 2.000000e+00 : f32
    %96 = vector.broadcast %cst_34 : f32 to vector<1x128xf32>
    %97 = arith.select %95, %96, %93 : vector<1x128xi1>, vector<1x128xf32>
    %98 = vector.extract_strided_slice %86 {offsets = [3, 0], sizes = [1, 128], strides = [1, 1]} : vector<16x128xf32> to vector<1x128xf32>
    %99 = arith.subf %97, %98 : vector<1x128xf32>
    %100 = math.absf %99 : vector<1x128xf32>
    %cst_35 = arith.constant 5.000000e-01 : f32
    %101 = vector.broadcast %cst_35 : f32 to vector<1x128xf32>
    %102 = arith.cmpf olt, %100, %101 : vector<1x128xf32>
    %cst_36 = arith.constant 1.000000e+00 : f32
    %cst_37 = arith.constant 0.000000e+00 : f32
    %103 = vector.broadcast %cst_36 : f32 to vector<1x128xf32>
    %104 = vector.broadcast %cst_37 : f32 to vector<1x128xf32>
    %105 = arith.select %102, %103, %104 : vector<1x128xi1>, vector<1x128xf32>
    %106 = arith.mulf %105, %17 : vector<1x128xf32>
    %107 = vector.extract_strided_slice %86 {offsets = [4, 0], sizes = [1, 128], strides = [1, 1]} : vector<16x128xf32> to vector<1x128xf32>
    %108 = vector.extract_strided_slice %86 {offsets = [5, 0], sizes = [1, 128], strides = [1, 1]} : vector<16x128xf32> to vector<1x128xf32>
    %109 = vector.extract_strided_slice %86 {offsets = [6, 0], sizes = [1, 128], strides = [1, 1]} : vector<16x128xf32> to vector<1x128xf32>
    %110 = vector.extract_strided_slice %86 {offsets = [7, 0], sizes = [1, 128], strides = [1, 1]} : vector<16x128xf32> to vector<1x128xf32>
    %111 = vector.extract_strided_slice %86 {offsets = [8, 0], sizes = [1, 128], strides = [1, 1]} : vector<16x128xf32> to vector<1x128xf32>
    %112 = vector.extract_strided_slice %86 {offsets = [9, 0], sizes = [1, 128], strides = [1, 1]} : vector<16x128xf32> to vector<1x128xf32>
    %113 = vector.extract_strided_slice %86 {offsets = [10, 0], sizes = [1, 128], strides = [1, 1]} : vector<16x128xf32> to vector<1x128xf32>
    %114 = vector.extract_strided_slice %86 {offsets = [11, 0], sizes = [1, 128], strides = [1, 1]} : vector<16x128xf32> to vector<1x128xf32>
    %115 = arith.subf %107, %111 : vector<1x128xf32>
    %116 = math.absf %115 : vector<1x128xf32>
    %117 = arith.subf %108, %112 : vector<1x128xf32>
    %118 = math.absf %117 : vector<1x128xf32>
    %119 = arith.addf %116, %118 : vector<1x128xf32>
    %120 = arith.subf %109, %113 : vector<1x128xf32>
    %121 = math.absf %120 : vector<1x128xf32>
    %122 = arith.addf %119, %121 : vector<1x128xf32>
    %123 = arith.subf %110, %114 : vector<1x128xf32>
    %124 = math.absf %123 : vector<1x128xf32>
    %125 = arith.addf %122, %124 : vector<1x128xf32>
    %126 = arith.mulf %125, %17 : vector<1x128xf32>
    %cst_38 = arith.constant 5.000000e-01 : f32
    %127 = vector.broadcast %cst_38 : f32 to vector<1x128xf32>
    %128 = arith.mulf %127, %109 : vector<1x128xf32>
    %129 = arith.subf %107, %128 : vector<1x128xf32>
    %cst_39 = arith.constant 5.000000e-01 : f32
    %130 = vector.broadcast %cst_39 : f32 to vector<1x128xf32>
    %131 = arith.mulf %130, %109 : vector<1x128xf32>
    %132 = arith.addf %107, %131 : vector<1x128xf32>
    %cst_40 = arith.constant 5.000000e-01 : f32
    %133 = vector.broadcast %cst_40 : f32 to vector<1x128xf32>
    %134 = arith.mulf %133, %110 : vector<1x128xf32>
    %135 = arith.subf %108, %134 : vector<1x128xf32>
    %cst_41 = arith.constant 5.000000e-01 : f32
    %136 = vector.broadcast %cst_41 : f32 to vector<1x128xf32>
    %137 = arith.mulf %136, %110 : vector<1x128xf32>
    %138 = arith.addf %108, %137 : vector<1x128xf32>
    %cst_42 = arith.constant 5.000000e-01 : f32
    %139 = vector.broadcast %cst_42 : f32 to vector<1x128xf32>
    %140 = arith.mulf %139, %113 : vector<1x128xf32>
    %141 = arith.subf %111, %140 : vector<1x128xf32>
    %cst_43 = arith.constant 5.000000e-01 : f32
    %142 = vector.broadcast %cst_43 : f32 to vector<1x128xf32>
    %143 = arith.mulf %142, %113 : vector<1x128xf32>
    %144 = arith.addf %111, %143 : vector<1x128xf32>
    %cst_44 = arith.constant 5.000000e-01 : f32
    %145 = vector.broadcast %cst_44 : f32 to vector<1x128xf32>
    %146 = arith.mulf %145, %114 : vector<1x128xf32>
    %147 = arith.subf %112, %146 : vector<1x128xf32>
    %cst_45 = arith.constant 5.000000e-01 : f32
    %148 = vector.broadcast %cst_45 : f32 to vector<1x128xf32>
    %149 = arith.mulf %148, %114 : vector<1x128xf32>
    %150 = arith.addf %112, %149 : vector<1x128xf32>
    %151 = arith.subf %132, %129 : vector<1x128xf32>
    %152 = arith.subf %138, %135 : vector<1x128xf32>
    %153 = arith.mulf %151, %152 : vector<1x128xf32>
    %154 = arith.subf %144, %141 : vector<1x128xf32>
    %155 = arith.subf %150, %147 : vector<1x128xf32>
    %156 = arith.mulf %154, %155 : vector<1x128xf32>
    %157 = arith.minimumf %132, %144 : vector<1x128xf32>
    %158 = arith.maximumf %129, %141 : vector<1x128xf32>
    %159 = arith.subf %157, %158 : vector<1x128xf32>
    %cst_46 = arith.constant 0.000000e+00 : f32
    %160 = vector.broadcast %cst_46 : f32 to vector<1x128xf32>
    %161 = arith.maximumf %159, %160 : vector<1x128xf32>
    %162 = arith.minimumf %138, %150 : vector<1x128xf32>
    %163 = arith.maximumf %135, %147 : vector<1x128xf32>
    %164 = arith.subf %162, %163 : vector<1x128xf32>
    %cst_47 = arith.constant 0.000000e+00 : f32
    %165 = vector.broadcast %cst_47 : f32 to vector<1x128xf32>
    %166 = arith.maximumf %164, %165 : vector<1x128xf32>
    %167 = arith.mulf %161, %166 : vector<1x128xf32>
    %168 = arith.addf %153, %156 : vector<1x128xf32>
    %169 = arith.subf %168, %167 : vector<1x128xf32>
    %cst_48 = arith.constant 1.000000e-07 : f32
    %170 = vector.broadcast %cst_48 : f32 to vector<1x128xf32>
    %171 = arith.maximumf %169, %170 : vector<1x128xf32>
    %172 = arith.divf %167, %171 : vector<1x128xf32>
    %173 = arith.maximumf %132, %144 : vector<1x128xf32>
    %174 = arith.minimumf %129, %141 : vector<1x128xf32>
    %175 = arith.subf %173, %174 : vector<1x128xf32>
    %cst_49 = arith.constant 0.000000e+00 : f32
    %176 = vector.broadcast %cst_49 : f32 to vector<1x128xf32>
    %177 = arith.maximumf %175, %176 : vector<1x128xf32>
    %178 = arith.maximumf %138, %150 : vector<1x128xf32>
    %179 = arith.minimumf %135, %147 : vector<1x128xf32>
    %180 = arith.subf %178, %179 : vector<1x128xf32>
    %cst_50 = arith.constant 0.000000e+00 : f32
    %181 = vector.broadcast %cst_50 : f32 to vector<1x128xf32>
    %182 = arith.maximumf %180, %181 : vector<1x128xf32>
    %183 = arith.mulf %177, %182 : vector<1x128xf32>
    %cst_51 = arith.constant 1.000000e-07 : f32
    %184 = vector.broadcast %cst_51 : f32 to vector<1x128xf32>
    %185 = arith.maximumf %183, %184 : vector<1x128xf32>
    %186 = arith.subf %185, %171 : vector<1x128xf32>
    %187 = arith.divf %186, %185 : vector<1x128xf32>
    %188 = arith.subf %172, %187 : vector<1x128xf32>
    %cst_52 = arith.constant 1.000000e+00 : f32
    %189 = vector.broadcast %cst_52 : f32 to vector<1x128xf32>
    %190 = arith.subf %189, %188 : vector<1x128xf32>
    %191 = arith.mulf %190, %17 : vector<1x128xf32>
    %192 = tpu.iota {dimensions = array<i32: 0>} : vector<8x128xi32>
    %c0_i32 = arith.constant 0 : i32
    %193 = vector.broadcast %c0_i32 : i32 to vector<8x128xi32>
    %194 = arith.cmpi eq, %192, %193 : vector<8x128xi32>
    %c1_i32 = arith.constant 1 : i32
    %195 = vector.broadcast %c1_i32 : i32 to vector<8x128xi32>
    %196 = arith.cmpi eq, %192, %195 : vector<8x128xi32>
    %c2_i32_53 = arith.constant 2 : i32
    %197 = vector.broadcast %c2_i32_53 : i32 to vector<8x128xi32>
    %198 = arith.cmpi eq, %192, %197 : vector<8x128xi32>
    %cst_54 = arith.constant 0.000000e+00 : f32
    %199 = vector.shape_cast %191 : vector<1x128xf32> to vector<1x128xf32>
    %200 = vector.broadcast %199 : vector<1x128xf32> to vector<8x128xf32>
    %201 = vector.broadcast %cst_54 : f32 to vector<8x128xf32>
    %202 = arith.select %198, %200, %201 : vector<8x128xi1>, vector<8x128xf32>
    %203 = vector.shape_cast %126 : vector<1x128xf32> to vector<1x128xf32>
    %204 = vector.broadcast %203 : vector<1x128xf32> to vector<8x128xf32>
    %205 = arith.select %196, %204, %202 : vector<8x128xi1>, vector<8x128xf32>
    %206 = vector.shape_cast %106 : vector<1x128xf32> to vector<1x128xf32>
    %207 = vector.broadcast %206 : vector<1x128xf32> to vector<8x128xf32>
    %208 = arith.select %194, %207, %205 : vector<8x128xi1>, vector<8x128xf32>
    %209 = tpu.concatenate %76, %75, %85, %208 in 0 : vector<8x128xf32>, vector<8x128xf32>, vector<8x128xf32>, vector<8x128xf32> -> vector<32x128xf32>
    %cst_55 = arith.constant dense<0.000000e+00> : vector<32xf32>
    %210 = vector.multi_reduction <add>, %209, %cst_55 [1] : vector<32x128xf32> to vector<32xf32>
    %211 = vector.shape_cast %210 : vector<32xf32> to vector<32x1xf32>
    %212 = vector.extract_strided_slice %211 {offsets = [0, 0], sizes = [8, 1], strides = [1, 1]} : vector<32x1xf32> to vector<8x1xf32>
    %213 = vector.shape_cast %212 : vector<8x1xf32> to vector<1x8x1xf32>
    %cst_56 = arith.constant dense<0.000000e+00> : vector<1xf32>
    %214 = vector.multi_reduction <add>, %213, %cst_56 [1, 2] : vector<1x8x1xf32> to vector<1xf32>
    %215 = vector.shape_cast %214 : vector<1xf32> to vector<1x1x1xf32>
    %216 = vector.extract %215[0, 0, 0] : f32 from vector<1x1x1xf32>
    %217 = vector.broadcast %216 : f32 to vector<1x1xf32>
    %218 = vector.extract_strided_slice %211 {offsets = [8, 0], sizes = [8, 1], strides = [1, 1]} : vector<32x1xf32> to vector<8x1xf32>
    %219 = vector.shape_cast %218 : vector<8x1xf32> to vector<1x8x1xf32>
    %cst_57 = arith.constant dense<0.000000e+00> : vector<1xf32>
    %220 = vector.multi_reduction <add>, %219, %cst_57 [1, 2] : vector<1x8x1xf32> to vector<1xf32>
    %221 = vector.shape_cast %220 : vector<1xf32> to vector<1x1x1xf32>
    %222 = vector.extract %221[0, 0, 0] : f32 from vector<1x1x1xf32>
    %223 = vector.broadcast %222 : f32 to vector<1x1xf32>
    %224 = vector.extract_strided_slice %211 {offsets = [16, 0], sizes = [8, 1], strides = [1, 1]} : vector<32x1xf32> to vector<8x1xf32>
    %c4 = arith.constant 4 : index
    %c0_58 = arith.constant 0 : index
    %c0_59 = arith.constant 0 : index
    %225 = vector.load %arg0[%c4, %c0_58, %c0_59] : memref<5x8x128xf32, #tpu.memory_space<vmem>>, vector<1x8x128xf32>
    %226 = vector.shape_cast %225 : vector<1x8x128xf32> to vector<8x128xf32>
    %227 = vector.extract_strided_slice %226 {offsets = [0, 0], sizes = [8, 1], strides = [1, 1]} : vector<8x128xf32> to vector<8x1xf32>
    %228 = tpu.iota {dimensions = array<i32: 0>} : vector<8x1xi32>
    %c2_i32_60 = arith.constant 2 : i32
    %229 = vector.broadcast %c2_i32_60 : i32 to vector<8x1xi32>
    %230 = arith.cmpi slt, %228, %229 : vector<8x1xi32>
    %231 = arith.extui %230 : vector<8x1xi1> to vector<8x1xi32>
    %232 = arith.sitofp %231 : vector<8x1xi32> to vector<8x1xf32>
    %233 = arith.subf %224, %227 : vector<8x1xf32>
    %234 = math.absf %233 : vector<8x1xf32>
    %235 = arith.mulf %234, %232 : vector<8x1xf32>
    %236 = vector.shape_cast %235 : vector<8x1xf32> to vector<1x8x1xf32>
    %cst_61 = arith.constant dense<0.000000e+00> : vector<1xf32>
    %237 = vector.multi_reduction <add>, %236, %cst_61 [1, 2] : vector<1x8x1xf32> to vector<1xf32>
    %238 = vector.shape_cast %237 : vector<1xf32> to vector<1x1x1xf32>
    %239 = vector.extract %238[0, 0, 0] : f32 from vector<1x1x1xf32>
    %240 = vector.broadcast %239 : f32 to vector<1x1xf32>
    %241 = vector.extract_strided_slice %211 {offsets = [24, 0], sizes = [1, 1], strides = [1, 1]} : vector<32x1xf32> to vector<1x1xf32>
    %242 = vector.extract_strided_slice %211 {offsets = [25, 0], sizes = [1, 1], strides = [1, 1]} : vector<32x1xf32> to vector<1x1xf32>
    %243 = vector.extract_strided_slice %211 {offsets = [26, 0], sizes = [1, 1], strides = [1, 1]} : vector<32x1xf32> to vector<1x1xf32>
    %244 = arith.divf %217, %223 : vector<1x1xf32>
    %cst_62 = arith.constant 1.000000e+02 : f32
    %245 = vector.broadcast %cst_62 : f32 to vector<1x1xf32>
    %246 = arith.mulf %245, %241 : vector<1x1xf32>
    %cst_63 = arith.constant 8.000000e+00 : f32
    %247 = vector.broadcast %cst_63 : f32 to vector<1x1xf32>
    %248 = arith.divf %246, %247 : vector<1x1xf32>
    %cst_64 = arith.constant 1.000000e+02 : f32
    %249 = vector.broadcast %cst_64 : f32 to vector<1x1xf32>
    %250 = arith.subf %249, %248 : vector<1x1xf32>
    %cst_65 = arith.constant 2.000000e+00 : f32
    %251 = vector.broadcast %cst_65 : f32 to vector<1x1xf32>
    %252 = arith.divf %240, %251 : vector<1x1xf32>
    %253 = vector.broadcast %2 : f32 to vector<1x1xf32>
    %254 = arith.mulf %242, %253 : vector<1x1xf32>
    %255 = vector.broadcast %2 : f32 to vector<1x1xf32>
    %256 = arith.mulf %243, %255 : vector<1x1xf32>
    %257 = tpu.iota {dimensions = array<i32: 1>} : vector<1x128xi32>
    %c0_i32_66 = arith.constant 0 : i32
    %258 = vector.broadcast %c0_i32_66 : i32 to vector<1x128xi32>
    %259 = arith.cmpi eq, %257, %258 : vector<1x128xi32>
    %c1_i32_67 = arith.constant 1 : i32
    %260 = vector.broadcast %c1_i32_67 : i32 to vector<1x128xi32>
    %261 = arith.cmpi eq, %257, %260 : vector<1x128xi32>
    %c2_i32_68 = arith.constant 2 : i32
    %262 = vector.broadcast %c2_i32_68 : i32 to vector<1x128xi32>
    %263 = arith.cmpi eq, %257, %262 : vector<1x128xi32>
    %c3_i32 = arith.constant 3 : i32
    %264 = vector.broadcast %c3_i32 : i32 to vector<1x128xi32>
    %265 = arith.cmpi eq, %257, %264 : vector<1x128xi32>
    %c4_i32 = arith.constant 4 : i32
    %266 = vector.broadcast %c4_i32 : i32 to vector<1x128xi32>
    %267 = arith.cmpi eq, %257, %266 : vector<1x128xi32>
    %cst_69 = arith.constant 0.000000e+00 : f32
    %268 = vector.shape_cast %256 : vector<1x1xf32> to vector<1x1xf32>
    %269 = vector.broadcast %268 : vector<1x1xf32> to vector<1x128xf32>
    %270 = vector.broadcast %cst_69 : f32 to vector<1x128xf32>
    %271 = arith.select %267, %269, %270 : vector<1x128xi1>, vector<1x128xf32>
    %272 = vector.shape_cast %254 : vector<1x1xf32> to vector<1x1xf32>
    %273 = vector.broadcast %272 : vector<1x1xf32> to vector<1x128xf32>
    %274 = arith.select %265, %273, %271 : vector<1x128xi1>, vector<1x128xf32>
    %275 = vector.shape_cast %252 : vector<1x1xf32> to vector<1x1xf32>
    %276 = vector.broadcast %275 : vector<1x1xf32> to vector<1x128xf32>
    %277 = arith.select %263, %276, %274 : vector<1x128xi1>, vector<1x128xf32>
    %278 = vector.shape_cast %250 : vector<1x1xf32> to vector<1x1xf32>
    %279 = vector.broadcast %278 : vector<1x1xf32> to vector<1x128xf32>
    %280 = arith.select %261, %279, %277 : vector<1x128xi1>, vector<1x128xf32>
    %281 = vector.shape_cast %244 : vector<1x1xf32> to vector<1x1xf32>
    %282 = vector.broadcast %281 : vector<1x1xf32> to vector<1x128xf32>
    %283 = arith.select %259, %282, %280 : vector<1x128xi1>, vector<1x128xf32>
    %c0_70 = arith.constant 0 : index
    %c0_71 = arith.constant 0 : index
    %284 = vector.load %arg3[%c0_70, %c0_71] : memref<1x128xf32, #tpu.memory_space<vmem>>, vector<1x128xf32>
    tpu.vector_store %arg3[%c0_70, %c0_71], %283 {strides = array<i32>} : memref<1x128xf32, #tpu.memory_space<vmem>>, vector<1x128xf32>,
    return
  }
}

</mosaic_0001>

<bundles_post_ra>
// kernel: tpu_custom_call.1
= control target key start
LH: loop header
LB: loop body
LE: loop exit
PB: predicated region body
PF: predicated region fallthrough
CT: control target
= control target key end

     0   :  { %8 = vsyncpa [#allocation3], 0  ;;  %s571_s0 = inlined_call_operand.hbm [shape: f32[5,8,128], index: 0, kind: input, shape index: {}]   ;;  %s572_s1 = inlined_call_operand.hbm [shape: f32[16,128], index: 1, kind: input, shape index: {}]   ;;  %s573_s2 = inlined_call_operand.vmem [shape: f32[2], index: 2, kind: input, shape index: {}]   ;;  %s574_s3 = inlined_call_operand.hbm [shape: f32[1,128], index: 3, kind: output, shape index: {}]  }
   0x1   :  { %9 = vsyncpa [#allocation7], 0 }
   0x2   :  { %10 = vsyncpa [#allocation5], 0 }
   0x3   :  { %11 = vsyncpa [#allocation4], 0  ;;  %s451_s12 = smov [#allocation2]  }
   0x4   :  { %s17_s13 = sshll.u32 %s451_s12, 4  ;;  %s18_s13 = int_to_ptr.vmem [resolvable:$true] %s17_s13 }
   0x5   :  { %s379_s14 = scalar_lea.vmem %s18_s13, 640  ;;  %p384_p1 = scmp.lt.s32.totalorder %s18_s13, %s18_s13 }
   0x6   :  { %p380_p0 = scmp.ne.s32.totalorder %s18_s13, %s379_s14  ;;  %p385_p2 = scmp.lt.s32.totalorder %s379_s14, %s379_s14 }
   0x8   :  { %p386_p3 = por %p385_p2, %p384_p1 }
   0xa   :  { %p387_p4 = pnand %p386_p3, %p380_p0 }
   0xc   :  { %390 = shalt.err (!%p387_p4)
}
   0xd   :  { %s452_s15 = smov 128   ;;  %s453_s16 = smov 8  }
   0xe   :  { %23 = dma.hbm_to_vmem [thread:$0]  %s571_s0, 640, %s18_s13, [#allocation3], %s452_s15, %s452_s15, %s453_s16  }
   0xf   :  { %s454_s19 = smov [#allocation6]   ;;  %s42_s23 = sshll.u32 %s573_s2, 4  ;;  %s43_s23 = int_to_ptr.vmem [resolvable:$true] %s42_s23 }
  0x10   :  { %s29_s20 = sshll.u32 %s454_s19, 4  ;;  %s30_s20 = int_to_ptr.vmem [resolvable:$true] %s29_s20 }
  0x11   :  { %s399_s24 = scalar_lea.vmem %s30_s20, 256  ;;  %p404_p6 = scmp.lt.s32.totalorder %s30_s20, %s30_s20 }
  0x12   :  { %p400_p5 = scmp.ne.s32.totalorder %s30_s20, %s399_s24  ;;  %p405_p7 = scmp.lt.s32.totalorder %s399_s24, %s399_s24 }
  0x14   :  { %p406_p8 = por %p405_p7, %p404_p6 }
  0x16   :  { %p407_p9 = pnand %p406_p8, %p400_p5 }
  0x18   :  { %410 = shalt.err (!%p407_p9)
}
  0x19   :  { %35 = dma.hbm_to_vmem [thread:$0]  %s572_s1, 256, %s30_s20, [#allocation7], %s452_s15, %s452_s15, %s453_s16  }
  0x1a   :  { %s411_s0 = scalar_lea.vmem %s43_s23, 16  ;;  %p416_p11 = scmp.lt.s32.totalorder %s43_s23, %s43_s23 }
  0x1b   :  { %p412_p10 = scmp.ne.s32.totalorder %s43_s23, %s411_s0  ;;  %p417_p12 = scmp.lt.s32.totalorder %s411_s0, %s411_s0 }
  0x1d   :  { %p418_p13 = por %p417_p12, %p416_p11 }
  0x1f   :  { %p419_p0 = pnand %p418_p13, %p412_p10 }
  0x21   :  { %422 = shalt.err (!%p419_p0)
}
  0x22   :  { %s455_s2 = smov [#allocation8]  }
  0x23   :  { %45 = dma.vmem_to_smem %s43_s23, 16, %s455_s2, [#allocation5]  }
  0x24   :  { %443 = dma.done.wait [#allocation3], 640  }
  0x25   :  { %444 = vsyncadd [#allocation3], 4294966656 }
  0x26   :  { %445 = dma.done.wait [#allocation7], 256  }
  0x27   :  { %446 = vsyncadd [#allocation7], 4294967040 }
  0x28   :  { %447 = dma.done.wait [#allocation5], 16  }
  0x29   :  { %448 = vsyncadd [#allocation5], 4294967280 }
  0x2a   :  { %55 = sfence }
  0x2b   :  { %v62_v0 = vlaneseq  ;;  %v489_v1 = vld [vmem:[#allocation2] sm:$0xff]  ;;  %v491_v2 = vld [vmem:[#allocation2 + $0x8] sm:$0xff]  ;;  %v493_v3 = vld [vmem:[#allocation2 + $0x10] sm:$0xff]  ;;  %v456_v7 = vmov 0.0   ;;  %v457_v31 = vmov 1.0   ;;  %s331_s1 = sld [smem:[#allocation8 + $0x1]] }
  0x2c   :  { %vm83_vm0 = vcmp.gt.f32.partialorder %v491_v2, %v489_v1  ;;  %v504_v9 = vld [vmem:[#allocation6] sm:$0xff]  ;;  %v524_v18 = vld [vmem:[#allocation6 + $0x8] sm:$0xff]  ;;  %vm246_vm15 = vcmask 7168   ;;  %s56_s27 = sld [smem:[#allocation8]]  ;;  %s458_s28 = smov 1.0  }
  0x2d   :  { %v497_v4 = vshrl.u32 %v62_v0, 7  ;;  %v499_v5 = vand.u32 127, %v62_v0  ;;  %v84_v6 = vsel %vm83_vm0, %v491_v2, %v489_v1  ;;  %v85_v8 = vsel %vm83_vm0, 1.0, %v456_v7  ;;  %s459_s7 = smov [#allocation9]  }
  0x2e   :  { %vm90_vm1 = vcmp.gt.f32.partialorder %v493_v3, %v84_v6  ;;  %v125_v10 = vrot.slane %v504_v9, 7  ;;  %v138_v19 = vrot.slane %v504_v9, 1  ;;  %v161_v29 = vmul.f32 0.5, %v504_v9  ;;  %s320_s8 = sshll.u32 %s459_s7, 4  ;;  %s321_s8 = int_to_ptr.vmem [resolvable:$true] %s320_s8 }
  0x2f   :  { %vm66_vm2 = vcmp.lt.s32.totalorder %v497_v4, 2  ;;  %vm67_vm3 = vcmp.lt.s32.totalorder %v499_v5, 8  ;;  %v511_v11 = vsel %vm90_vm1, %v493_v3, %v84_v6  ;;  %v92_v12 = vsel %vm90_vm1, 2.0, %v85_v8  ;;  %s423_s9 = scalar_lea.vmem %s321_s8, 16  ;;  %s427_s10 = scalar_lea.vmem %s321_s8, 32 }
  0x30   :  { %vm68_vm4 = vmand %vm66_vm2, %vm67_vm3  ;;  %v516_v13 = vsel %vm67_vm3, 1.0, %v456_v7  ;;  %v97_v14 = vsub.f32 %v489_v1, %v511_v11  ;;  %v101_v15 = vsub.f32 %v491_v2, %v511_v11  ;;  %v105_v16 = vsub.f32 %v493_v3, %v511_v11  ;;  %p424_p1 = scmp.ne.s32.totalorder %s321_s8, %s423_s9  ;;  %p428_p2 = scmp.lt.s32.totalorder %s321_s8, %s321_s8 }
  0x31   :  { %v336_v17 = vadd.f32 -2.0, %v92_v12  ;;  %vm127_vm5 = vcmp.gt.f32.partialorder %v504_v9, %v125_v10  ;;  %v530_v24 = vsel %vm68_vm4, 1.0, %v456_v7  ;;  %v167_v30 = vmul.f32 0.5, %v524_v18  ;;  %p429_p3 = scmp.lt.s32.totalorder %s427_s10, %s423_s9 }
  0x32   :  { %v98_v20 = vmul.f32 1.442695, %v97_v14  ;;  %v102_v21 = vmul.f32 1.442695, %v101_v15  ;;  %v106_v22 = vmul.f32 1.442695, %v105_v16  ;;  %v128_v23 = vsel %vm127_vm5, %v504_v9, %v125_v10  ;;  %s57_s29 = smax.f32 %s458_s28, %s56_s27 }
  0x33   :  { %v118_v25 = vand.u32 2147483647, %v336_v17  ;;  %v129_v26 = vsel %vm127_vm5, 1.0, %v456_v7  ;;  %v131_v27 = vrot.slane %v128_v23, 7  ;;  %v163_v36 = vrot.slane %v161_v29, 2  ;;  %v74_v14 = vld [vmem:[#allocation2 + $0x18] sm:$0xff]  ;;  %p430_p4 = por %p429_p3, %p428_p2 }
  0x34   :  { %355 = vpow2.f32 %v98_v20  ;;  %v135_v28 = vrot.slane %v129_v26, 7  ;;  %v169_v37 = vrot.slane %v167_v30, 2  ;;  %v335_v23 = vadd.f32 -2.0, %v74_v14 }
  0x35   :  { %357 = vpow2.f32 %v102_v21  ;;  %vm119_vm6 = vcmp.lt.f32.partialorder %v118_v25, 0.5  ;;  %vm133_vm7 = vcmp.gt.f32.partialorder %v504_v9, %v131_v27  ;;  %v165_v39 = vsub.f32 %v504_v9, %v163_v36  ;;  %p431_p5 = pnand %p430_p4, %p424_p1 }
  0x36   :  { %359 = vpow2.f32 %v106_v22  ;;  %v120_v32 = vsel %vm119_vm6, 0.0, %v457_v31  ;;  %v137_v33 = vsel %vm133_vm7, 2.0, %v135_v28  ;;  %v166_v40 = vadd.f32 %v163_v36, %v504_v9 }
  0x37   :  { %v121_v34 = vmul.f32 %v530_v24, %v120_v32  ;;  %v140_v35 = vsub.f32 %v137_v33, %v138_v19  ;;  %v171_v41 = vsub.f32 %v524_v18, %v169_v37  ;;  %v172_v42 = vadd.f32 %v169_v37, %v524_v18 }
  0x38   :  { %v173_v44 = vsub.f32 %v166_v40, %v165_v39  ;;  %v334_v19 = vadd.f32 -1.0, %v74_v14  ;;  %v80_v22 = vand.u32 2147483647, %v74_v14  ;;  %v94_v27 = vand.u32 2147483647, %v335_v23 }
  0x39   :  { %v141_v38 = vand.u32 2147483647, %v140_v35  ;;  %242 = vadd.xlane.f32.xlu1 %v121_v34  ;;  %v178_v45 = vsub.f32 %v172_v42, %v171_v41  ;;  %v184_v46 = vrot.slane %v172_v42, 4  ;;  %v188_v48 = vrot.slane %v171_v41, 4 }
  0x3a   :  { %v175_v49 = vrot.slane %v173_v44, 1  ;;  %v87_v26 = vand.u32 2147483647, %v334_v19  ;;  %vm81_vm9 = vcmp.lt.f32.partialorder %v80_v22, 0.5  ;;  %v146_v28 = vrot.slane %v524_v18, 4 }
  0x3b   :  { %vm142_vm8 = vcmp.lt.f32.partialorder %v141_v38, 0.5  ;;  %v180_v50 = vrot.slane %v178_v45, 1  ;;  %v186_v51 = vmin.f32 %v166_v40, %v184_v46  ;;  %v205_v52 = vmax.f32 %v166_v40, %v184_v46 }
  0x3c   :  { %v143_v43 = vsel %vm142_vm8, 1.0, %v456_v7  ;;  %v190_v53 = vmax.f32 %v165_v39, %v188_v48  ;;  %v206_v54 = vmin.f32 %v165_v39, %v188_v48  ;;  %v177_v57 = vmul.f32 %v175_v49, %v173_v44 }
  0x3d   :  { %v543_v47 = vmul.f32 %v516_v13, %v143_v43  ;;  %v182_v55 = vmul.f32 %v180_v50, %v178_v45  ;;  %v82_v29 = vsel %vm81_vm9, %v489_v1, 0.0  ;;  %vm88_vm10 = vcmp.lt.f32.partialorder %v87_v26, 0.5 }
  0x3e   :  { %v191_v58 = vsub.f32 %v186_v51, %v190_v53  ;;  %v207_v59 = vsub.f32 %v205_v52, %v206_v54  ;;  %vm95_vm11 = vcmp.lt.f32.partialorder %v94_v27, 0.5  ;;  %v113_v30 = vstv %s331_s1 }
  0x3f   :  { %v198_v61 = vrot.slane %v182_v55, 4  ;;  %v148_v31 = vsub.f32 %v504_v9, %v146_v28  ;;  %v89_v32 = vsel %vm88_vm10, %v491_v2, %v82_v29  ;;  %v114_v34 = vsel %vm95_vm11, %v113_v30, 1.0 }
  0x40   :  { %v192_v63 = vmax.f32 %v191_v58, 0.0  ;;  %v208_v0 = vmax.f32 %v207_v59, 0.0  ;;  %v96_v37 = vsel %vm95_vm11, %v493_v3, %v89_v32  ;;  %v115_v18 = vmul.f32 %v530_v24, %v114_v34  ;;  %v270_v59 = vld [vmem:[#allocation2 + $0x20] sm:$0xff] }
  0x41   :  { %v356_v56 = vpop.eup %355  ;;  %v200_v10 = vadd.f32 %v198_v61, %v177_v57  ;;  %v149_v36 = vand.u32 2147483647, %v148_v31  ;;  %v225_v52 = vsub.s32 4, %v497_v4  ;;  %vm222_vm12 = vcmp.eq.s32.totalorder %v497_v4, 2 }
  0x42   :  { %v358_v60 = vpop.eup %357  ;;  %v194_v8 = vrot.slane %v192_v63, 1  ;;  %v210_v12 = vrot.slane %v208_v0, 1  ;;  %v235_v53 = vsub.s32 2, %v497_v4  ;;  %vm221_vm13 = vcmp.eq.s32.totalorder %v497_v4, 1 }
  0x43   :  { %v360_v62 = vpop.eup %359  ;;  %v104_v6 = vadd.f32 %v358_v60, %v356_v56  ;;  %v151_v1 = vrot.slane %v149_v36, 1  ;;  %v154_v44 = vrot.slane %v149_v36, 2  ;;  %v157_v48 = vrot.slane %v149_v36, 3 }
  0x44   :  { %v196_v16 = vmul.f32 %v194_v8, %v192_v63  ;;  %v212_v17 = vmul.f32 %v210_v12, %v208_v0  ;;  %vm220_vm14 = vcmp.eq.s32.totalorder %v497_v4, 0  ;;  %v236_v56 = vrot.slane %v543_v47, %v235_v53 }
  0x45   :  { %v108_v15 = vadd.f32 %v360_v62, %v104_v6  ;;  %v153_v9 = vadd.f32 %v151_v1, %v149_v36  ;;  %v58_v4 = vstv %s57_s29  ;;  %vm301_vm0 = vcmp.eq.s32.totalorder %v499_v5, 4 }
  0x46   :  { %v201_v20 = vsub.f32 %v200_v10, %v196_v16  ;;  %v213_v21 = vmax.f32 %v212_v17, 1e-07  ;;  %vm300_vm1 = vcmp.eq.s32.totalorder %v499_v5, 3  ;;  %vm298_vm3 = vcmp.eq.s32.totalorder %v499_v5, 1 }
  0x47   :  { %361 = vlog2.f32 %v108_v15  ;;  %v156_v46 = vadd.f32 %v154_v44, %v153_v9  ;;  %vm297_vm4 = vcmp.eq.s32.totalorder %v499_v5, 0 }
  0x48   :  { %v202_v25 = vmax.f32 %v201_v20, 1e-07  ;;  %363 = vrcp.f32 %v213_v21 }
  0x49   :  { %v159_v3 = vadd.f32 %v157_v48, %v156_v46 }
  0x4a   :  { %365 = vrcp.f32 %v202_v25  ;;  %v214_v41 = vsub.f32 %v213_v21, %v202_v25 }
  0x4b   :  { %v160_v24 = vmul.f32 %v516_v13, %v159_v3  ;;  %367 = vrcp.f32 %v58_v4 }
  0x4d   :  { %v231_v55 = vrot.slane %v160_v24, %v225_v52 }
  0x54   :  { %v362_v33 = vpop.eup %361 }
  0x55   :  { %v110_v35 = vmul.f32 0.6931472, %v362_v33  ;;  %v364_v40 = vpop.eup %363 }
  0x56   :  { %v216_v45 = vmul.f32 %v364_v40, %v214_v41 }
  0x57   :  { %v111_v38 = vadd.f32 %v110_v35, %v511_v11  ;;  %v366_v42 = vpop.eup %365  ;;  %v337_v11 = vsel %vm66_vm2, 1.0, %v456_v7  ;;  %vm299_vm2 = vcmp.eq.s32.totalorder %v499_v5, 2 }
  0x58   :  { %v204_v2 = vmul.f32 %v366_v42, %v196_v16  ;;  %v368_v47 = vpop.eup %367 }
  0x59   :  { %v112_v39 = vsub.f32 %v111_v38, %v96_v37  ;;  %338 = vpush %v368_v47 }
  0x5a   :  { %v217_v49 = vsub.f32 %v204_v2, %v216_v45 }
  0x5b   :  { %v116_v43 = vmul.f32 %v115_v18, %v112_v39 }
  0x5c   :  { %v218_v50 = vsub.f32 1.0, %v217_v49 }
  0x5d   :  { %238 = vadd.xlane.f32.xlu0 %v116_v43 }
  0x5e   :  { %v219_v51 = vmul.f32 %v516_v13, %v218_v50 }
  0x60   :  { %v226_v54 = vrot.slane %v219_v51, %v225_v52 }
  0x61   :  { %240 = vadd.xlane.f32.xlu0 %v115_v18 }
  0x62   :  { %v227_v57 = vsel %vm222_vm12, %v226_v54, 0.0 }
  0x63   :  { %v232_v7 = vsel %vm221_vm13, %v231_v55, %v227_v57 }
  0x64   :  { %v237_v58 = vsel %vm220_vm14, %v236_v56, %v232_v7 }
  0x8a   :  { %s339_s30 = spop %338 }
  0x8b   :  { %v295_v36 = vstv %s339_s30 }
  0xc2   :  { %v243_v60 = vpop.xlane.xlu1 %242 }
  0xc3   :  { %v273_v13 = vsub.f32 %v243_v60, %v270_v59 }
  0xc5   :  { %v274_v61 = vand.u32 2147483647, %v273_v13 }
  0xc7   :  { %v275_v62 = vmul.f32 %v337_v11, %v274_v61 }
  0xc9   :  { %v276_v6 = vsel %vm246_vm15, %v275_v62, 0.0 }
  0xe6   :  { %v239_v63 = vpop.xlane.xlu0 %238 }
  0xe7   :  { %v247_v0 = vsel %vm246_vm15, %v239_v63, 0.0 }
  0xe8   :  { %248 = vadd.xlane.f32.xlu1 %v247_v0 }
  0xea   :  { %v241_v8 = vpop.xlane.xlu0 %240 }
  0xeb   :  { %v258_v10 = vsel %vm246_vm15, %v241_v8, 0.0 }
  0xec   :  { %259 = vadd.xlane.f32.xlu0 %v258_v10  ;;  %277 = vadd.xlane.f32.xlu1 %v276_v6 }
  0xf0   :  { %244 = vadd.xlane.f32.xlu0 %v237_v58 }
 0x171   :  { %v249_v12 = vpop.xlane.xlu1 %248 }
 0x172   :  { %v250_v14 = vrot.slane %v249_v12, 4 }
 0x174   :  { %v251_v15 = vadd.f32 %v250_v14, %v249_v12 }
 0x175   :  { %v260_v16 = vpop.xlane.xlu0 %259  ;;  %v278_v17 = vpop.xlane.xlu1 %277 }
 0x176   :  { %v252_v19 = vrot.slane %v251_v15, 2  ;;  %v261_v20 = vrot.slane %v260_v16, 4  ;;  %v279_v21 = vrot.slane %v278_v17, 4 }
 0x178   :  { %v262_v22 = vadd.f32 %v261_v20, %v260_v16  ;;  %v280_v23 = vadd.f32 %v279_v21, %v278_v17  ;;  %v253_v25 = vadd.f32 %v252_v19, %v251_v15 }
 0x179   :  { %v245_v37 = vpop.xlane.xlu0 %244 }
 0x17a   :  { %v263_v26 = vrot.slane %v262_v22, 2  ;;  %v281_v27 = vrot.slane %v280_v23, 2  ;;  %v254_v28 = vrot.slane %v253_v25, 1  ;;  %v296_v38 = vmul.f32 %v295_v36, %v245_v37 }
 0x17b   :  { %v289_v41 = vmul.f32 100.0, %v245_v37 }
 0x17c   :  { %v282_v29 = vadd.f32 %v281_v27, %v280_v23  ;;  %v255_v30 = vadd.f32 %v254_v28, %v253_v25  ;;  %v264_v31 = vadd.f32 %v263_v26, %v262_v22  ;;  %v302_v18 = vsel %vm301_vm0, %v296_v38, 0.0 }
 0x17d   :  { %v304_v40 = vrot.slane %v302_v18, 1  ;;  %v291_v9 = vmul.f32 0.125, %v289_v41 }
 0x17e   :  { %340 = vpush %v255_v30  ;;  %v265_v32 = vrot.slane %v264_v31, 1  ;;  %v283_v33 = vrot.slane %v282_v29, 1 }
 0x17f   :  { %v306_v43 = vsel %vm300_vm1, %v296_v38, %v304_v40  ;;  %v292_v2 = vsub.f32 100.0, %v291_v9 }
 0x180   :  { %v266_v34 = vadd.f32 %v265_v32, %v264_v31  ;;  %v284_v35 = vadd.f32 %v283_v33, %v282_v29 }
 0x182   :  { %342 = vpush %v266_v34 }
 0x183   :  { %344 = vpush %v284_v35 }
 0x1af   :  { %s341_s4 = spop %340 }
 0x1b0   :  { %v257_v48 = vstv %s341_s4 }
 0x1b3   :  { %s343_s5 = spop %342 }
 0x1b4   :  { %v268_v39 = vstv %s343_s5  ;;  %s345_s6 = spop %344 }
 0x1b5   :  { %369 = vrcp.f32 %v268_v39  ;;  %v286_v1 = vstv %s345_s6 }
 0x1b6   :  { %v294_v42 = vmul.f32 0.5, %v286_v1 }
 0x1b8   :  { %v307_v44 = vsel %vm299_vm2, %v294_v42, %v306_v43 }
 0x1b9   :  { %v309_v45 = vrot.slane %v307_v44, 1 }
 0x1bb   :  { %v311_v3 = vsel %vm298_vm3, %v292_v2, %v309_v45 }
 0x1c2   :  { %v370_v46 = vpop.eup %369 }
 0x1c3   :  { %v288_v49 = vmul.f32 %v370_v46, %v257_v48 }
 0x1c5   :  { %v312_v50 = vsel %vm297_vm4, %v288_v49, %v311_v3 }
 0x1c6   :  { %313 = vst [vmem:[#allocation9] sm:$0x1] %v312_v50 }
 0x1c7   :  { %434 = shalt.err (!%p431_p5)
}
 0x1c8   :  { %323 = dma.vmem_to_hbm [thread:$0]  %s321_s8, 16, %s574_s3, [#allocation4]  }
 0x1c9   :  { %449 = dma.done.wait [#allocation4], 16  }
 0x1ca   :  { %450 = vsyncadd [#allocation4], 4294967280 }
 0x1cb   :  { %327 = vsyncpa [#allocation3], 1 }
 0x1cc   :  { %328 = vsyncpa [#allocation7], 1 }
 0x1cd   :  { %329 = vsyncpa [#allocation4], 1 }
 0x1ce   :  { %330 = vsyncpa [#allocation5], 1 }

</bundles_post_ra>
